<compile_context>
chip_gen: v5e
topology: v5e:2x2
jax: 0.10.0
libtpu: 0.0.40
codegen_flags: <defaults>
</compile_context>

<pallas_src>
import functools

import jax
import jax.numpy as jnp
from jax.experimental import pallas as pl
from jax.experimental.pallas import tpu as pltpu

LANE = 128  # padded feature width (lane-dense intermediates)


def _round_up(x, m):
    return ((x + m - 1) // m) * m


def _spec(shape, index_map, buffer_count=None):
    """BlockSpec helper; requests N-deep buffering when supported."""
    if buffer_count is not None:
        try:
            return pl.BlockSpec(shape, index_map,
                                pipeline_mode=pl.Buffered(buffer_count))
        except TypeError:
            pass  # older API without pipeline_mode -> default double-buffering
    return pl.BlockSpec(shape, index_map)


def actor_kernel(x_ref, w_ref, b_ref, out_ref, *,
                 state_dim, action_dim, n_layers, max_action):
    """Whole Actor MLP for one batch tile, fully VMEM-resident.

    x_ref  : (Bt, S)   f32   batch tile of states
    w_ref  : (L,128,128) bf16 zero-padded weight slab, L = n_layers + 1
    b_ref  : (L,1,128)  f32  zero-padded bias slab
    out_ref: (Bt, A)    f32  actions
    """
    wdt = w_ref.dtype  # bf16 MXU operands, f32 accumulation

    x = x_ref[...].astype(wdt)                                        # (Bt, S)

    # Layer 0: (Bt, S) @ (S, 128) -> (Bt, 128); only the first S rows of the
    # padded slab are real, so slice them statically (short MXU weight load).
    h = jnp.dot(x, w_ref[0, :state_dim, :],
                preferred_element_type=jnp.float32) + b_ref[0]        # f32
    h = jnp.maximum(h, 0.0)

    # Hidden layers (n_layers == 2 adds one). Padded rows/cols are zero, so
    # the full 128x128 dot is exact and stays lane-dense.
    for l in range(1, n_layers):
        h = jnp.dot(h.astype(wdt), w_ref[l],
                    preferred_element_type=jnp.float32) + b_ref[l]
        h = jnp.maximum(h, 0.0)

    # Output layer; slice the real action columns BEFORE tanh (EUP work x32
    # smaller), then scale by max_action.
    h = jnp.dot(h.astype(wdt), w_ref[n_layers],
                preferred_element_type=jnp.float32) + b_ref[n_layers]
    out_ref[...] = (max_action * jnp.tanh(h[:, :action_dim])).astype(out_ref.dtype)


def actor_forward(state, w_slab, b_slab, *,
                  action_dim, max_action, n_layers, block_b=None):
    """JAX wrapper mirroring Actor.forward(state) -> actions of shape (B, A)."""
    B, S = state.shape
    L, P, _ = w_slab.shape
    assert L == n_layers + 1

    # Tile policy: one fat tile for small batches; exactly 2 balanced tiles
    # (capped at 2048 rows) for big batches so v7x's two TCs each take one.
    if block_b is None:
        if B <= 256:
            bb = B
        else:
            bb = min(_round_up(pl.cdiv(B, 2), 8), 2048)
    else:
        bb = min(B, block_b)
    grid = (pl.cdiv(B, bb),)

    kernel = functools.partial(
        actor_kernel,
        state_dim=S, action_dim=action_dim,
        n_layers=n_layers, max_action=float(max_action),
    )

    # Advisory cost hint (padded-shape arithmetic is fine for scheduling).
    cost = pl.CostEstimate(
        flops=2 * B * L * P * P,
        transcendentals=B * action_dim,
        bytes_accessed=(state.size * state.dtype.itemsize
                        + w_slab.size * w_slab.dtype.itemsize
                        + b_slab.size * b_slab.dtype.itemsize
                        + B * action_dim * 4),
    )

    return pl.pallas_call(
        kernel,
        out_shape=jax.ShapeDtypeStruct((B, action_dim), state.dtype),
        grid_spec=pltpu.PrefetchScalarGridSpec(
            num_scalar_prefetch=0,
            grid=grid,
            in_specs=[
                # Batch-tiled states (double-buffered by default).
                pl.BlockSpec((bb, S), lambda i: (i, 0)),
                # Grid-invariant weights / biases: fetch once, stay resident.
                _spec((L, P, P), lambda i: (0, 0, 0), buffer_count=1),
                _spec((L, 1, P), lambda i: (0, 0, 0), buffer_count=1),
            ],
            out_specs=pl.BlockSpec((bb, action_dim), lambda i: (i, 0)),
        ),
        compiler_params=pltpu.CompilerParams(
            dimension_semantics=("parallel",),  # v7x: shard batch tiles over 2 TCs
        ),
        cost_estimate=cost,
    )(state, w_slab, b_slab)


def init_actor_params(key, state_dim, action_dim, hidden_dims, n_layers):
    """Deterministic synthetic init (PyTorch-Linear-style uniform bounds).

    Returns a list of (W, b) with W of shape (in, out) (transposed vs torch),
    so the kernel computes x @ W + b == x @ W_torch.T + b.
    """
    dims = [(state_dim, hidden_dims)]
    if n_layers == 2:
        dims.append((hidden_dims, hidden_dims))
    dims.append((hidden_dims, action_dim))

    params = []
    for fan_in, fan_out in dims:
        key, kw, kb = jax.random.split(key, 3)
        bound = 1.0 / (fan_in ** 0.5)
        w = jax.random.uniform(kw, (fan_in, fan_out), jnp.float32, -bound, bound)
        b = jax.random.uniform(kb, (fan_out,), jnp.float32, -bound, bound)
        params.append((w, b))
    return params


def pack_actor_params(params, pad=LANE, weight_dtype=jnp.bfloat16):
    """Zero-pad layers into one (L,pad,pad) bf16 weight slab + (L,1,pad) f32 bias slab."""
    L = len(params)
    w_slab = jnp.zeros((L, pad, pad), weight_dtype)
    b_slab = jnp.zeros((L, 1, pad), jnp.float32)
    for l, (w, b) in enumerate(params):
        fi, fo = w.shape
        w_slab = w_slab.at[l, :fi, :fo].set(w.astype(weight_dtype))
        b_slab = b_slab.at[l, 0, :fo].set(b)
    return w_slab, b_slab


def _reference(state, params, max_action):
    """Pure-JAX reference using the same bf16-rounded matmul operands."""
    h = state.astype(jnp.bfloat16).astype(jnp.float32)
    for i, (w, b) in enumerate(params):
        w_bf = w.astype(jnp.bfloat16).astype(jnp.float32)
        h = h @ w_bf + b[None, :]
        if i < len(params) - 1:
            h = jnp.maximum(h, 0.0)
    return max_action * jnp.tanh(h)


if __name__ == "__main__":
    key = jax.random.PRNGKey(0)
    k_s, k_p = jax.random.split(key)

    state_dim = 16
    action_dim = 4
    hidden_dims = 32
    max_action = 1.0

    # Small-batch checks for both Actor variants (n_layers = 1 and 2).
    for n_layers in (1, 2):
        params = init_actor_params(jax.random.fold_in(k_p, n_layers),
                                   state_dim, action_dim, hidden_dims, n_layers)
        w_slab, b_slab = pack_actor_params(params)

        state = jax.random.normal(k_s, (2, state_dim), jnp.float32)
        act = actor_forward(state, w_slab, b_slab,
                            action_dim=action_dim, max_action=max_action,
                            n_layers=n_layers)
        jax.block_until_ready(act)

        ref = _reference(state, params, max_action)
        assert act.shape == (2, action_dim)
        assert jnp.allclose(act, ref, atol=2e-2), f"mismatch (n_layers={n_layers})"

    # Batched path: exercises the 2-balanced-tile "parallel" grid.
    params2 = init_actor_params(jax.random.fold_in(k_p, 2),
                                state_dim, action_dim, hidden_dims, 2)
    w_slab2, b_slab2 = pack_actor_params(params2)

    for B in (1024, 300):  # even split, and a partial final tile
        state_big = jax.random.normal(jax.random.fold_in(k_s, B),
                                      (B, state_dim), jnp.float32)
        act_big = actor_forward(state_big, w_slab2, b_slab2,
                                action_dim=action_dim, max_action=max_action,
                                n_layers=2)
        jax.block_until_ready(act_big)
        ref_big = _reference(state_big, params2, max_action)
        assert act_big.shape == (B, action_dim)
        assert jnp.allclose(act_big, ref_big, atol=2e-2), f"mismatch (B={B})"

    print("KERNEL_OK")
</pallas_src>

<mosaic_0001>
module attributes {stable_mosaic.version = 11 : i64} {
  func.func @actor_kernel(%arg0: i32, %arg1: memref<2x16xf32, #tpu.memory_space<vmem>>, %arg2: memref<2x128x128xbf16, #tpu.memory_space<vmem>>, %arg3: memref<2x1x128xf32, #tpu.memory_space<vmem>>, %arg4: memref<2x4xf32, #tpu.memory_space<vmem>>) attributes {dimension_semantics = [#tpu.dimension_semantics<parallel>], iteration_bounds = array<i64: 1>, scalar_prefetch = 0 : i64, scratch_operands = 0 : i64, tpu.core_type = #tpu.core_type<tc>, window_params = [{transform_indices = @transform_0, window_bounds = array<i64: 2, 16>}, {pipeline_mode = #tpu.pipeline_mode<synchronous>, transform_indices = @transform_1, window_bounds = array<i64: 2, 128, 128>}, {pipeline_mode = #tpu.pipeline_mode<synchronous>, transform_indices = @transform_2, window_bounds = array<i64: 2, 1, 128>}, {transform_indices = @transform_3, window_bounds = array<i64: 2, 4>}]} {
    %c0 = arith.constant 0 : index
    %c0_0 = arith.constant 0 : index
    %0 = vector.load %arg1[%c0, %c0_0] : memref<2x16xf32, #tpu.memory_space<vmem>>, vector<2x16xf32>
    %1 = arith.truncf %0 : vector<2x16xf32> to vector<2x16xbf16>
    %c0_1 = arith.constant 0 : index
    %c0_2 = arith.constant 0 : index
    %c0_3 = arith.constant 0 : index
    %2 = vector.load %arg2[%c0_1, %c0_2, %c0_3] : memref<2x128x128xbf16, #tpu.memory_space<vmem>>, vector<1x16x128xbf16>
    %3 = vector.shape_cast %2 : vector<1x16x128xbf16> to vector<16x128xbf16>
    %cst = arith.constant dense<0.000000e+00> : vector<2x128xf32>
    %4 = tpu.matmul %1, %3, %cst {dimension_numbers = #tpu.dot_dimension_numbers<[1], [0], [0], [1], [0, 0, 1, 1], [], []>} : vector<2x16xbf16>, vector<16x128xbf16>, vector<2x128xf32> -> vector<2x128xf32>
    %c0_4 = arith.constant 0 : index
    %c0_5 = arith.constant 0 : index
    %c0_6 = arith.constant 0 : index
    %5 = vector.load %arg3[%c0_4, %c0_5, %c0_6] : memref<2x1x128xf32, #tpu.memory_space<vmem>>, vector<1x1x128xf32>
    %6 = vector.shape_cast %5 : vector<1x1x128xf32> to vector<1x128xf32>
    %7 = vector.broadcast %6 : vector<1x128xf32> to vector<2x128xf32>
    %8 = arith.addf %4, %7 : vector<2x128xf32>
    %cst_7 = arith.constant 0.000000e+00 : f32
    %9 = vector.broadcast %cst_7 : f32 to vector<2x128xf32>
    %10 = arith.maximumf %8, %9 : vector<2x128xf32>
    %11 = arith.truncf %10 : vector<2x128xf32> to vector<2x128xbf16>
    %c1 = arith.constant 1 : index
    %c0_8 = arith.constant 0 : index
    %c0_9 = arith.constant 0 : index
    %12 = vector.load %arg2[%c1, %c0_8, %c0_9] : memref<2x128x128xbf16, #tpu.memory_space<vmem>>, vector<1x128x128xbf16>
    %13 = vector.shape_cast %12 : vector<1x128x128xbf16> to vector<128x128xbf16>
    %cst_10 = arith.constant dense<0.000000e+00> : vector<2x128xf32>
    %14 = tpu.matmul %11, %13, %cst_10 {dimension_numbers = #tpu.dot_dimension_numbers<[1], [0], [0], [1], [0, 0, 1, 1], [], []>} : vector<2x128xbf16>, vector<128x128xbf16>, vector<2x128xf32> -> vector<2x128xf32>
    %c1_11 = arith.constant 1 : index
    %c0_12 = arith.constant 0 : index
    %c0_13 = arith.constant 0 : index
    %15 = vector.load %arg3[%c1_11, %c0_12, %c0_13] : memref<2x1x128xf32, #tpu.memory_space<vmem>>, vector<1x1x128xf32>
    %16 = vector.shape_cast %15 : vector<1x1x128xf32> to vector<1x128xf32>
    %17 = vector.broadcast %16 : vector<1x128xf32> to vector<2x128xf32>
    %18 = arith.addf %14, %17 : vector<2x128xf32>
    %19 = vector.extract_strided_slice %18 {offsets = [0, 0], sizes = [2, 4], strides = [1, 1]} : vector<2x128xf32> to vector<2x4xf32>
    %20 = math.tanh %19 : vector<2x4xf32>
    %cst_14 = arith.constant 1.000000e+00 : f32
    %21 = vector.broadcast %cst_14 : f32 to vector<2x4xf32>
    %22 = arith.mulf %21, %20 : vector<2x4xf32>
    %c0_15 = arith.constant 0 : index
    %c0_16 = arith.constant 0 : index
    %23 = vector.load %arg4[%c0_15, %c0_16] : memref<2x4xf32, #tpu.memory_space<vmem>>, vector<2x4xf32>
    tpu.vector_store %arg4[%c0_15, %c0_16], %22 {strides = array<i32>} : memref<2x4xf32, #tpu.memory_space<vmem>>, vector<2x4xf32>,
    return
  }
  func.func @transform_0(%arg0: i32) -> (i32, i32) {
    %c0_i32 = arith.constant 0 : i32
    %c0_i32_0 = arith.constant 0 : i32
    return %arg0, %c0_i32 : i32, i32
  }
  func.func @transform_1(%arg0: i32) -> (i32, i32, i32) {
    %c0_i32 = arith.constant 0 : i32
    %c0_i32_0 = arith.constant 0 : i32
    %c0_i32_1 = arith.constant 0 : i32
    %c0_i32_2 = arith.constant 0 : i32
    return %c0_i32, %c0_i32_0, %c0_i32_1 : i32, i32, i32
  }
  func.func @transform_2(%arg0: i32) -> (i32, i32, i32) {
    %c0_i32 = arith.constant 0 : i32
    %c0_i32_0 = arith.constant 0 : i32
    %c0_i32_1 = arith.constant 0 : i32
    %c0_i32_2 = arith.constant 0 : i32
    return %c0_i32, %c0_i32_0, %c0_i32_1 : i32, i32, i32
  }
  func.func @transform_3(%arg0: i32) -> (i32, i32) {
    %c0_i32 = arith.constant 0 : i32
    %c0_i32_0 = arith.constant 0 : i32
    return %arg0, %c0_i32 : i32, i32
  }
}

</mosaic_0001>

<bundles_post_ra>
// kernel: tpu_custom_call.1
= control target key start
LH: loop header
LB: loop body
LE: loop exit
PB: predicated region body
PF: predicated region fallthrough
CT: control target
= control target key end

     0   :  { %8 = vsyncpa [#allocation3], 0  ;;  %s398_s0 = inlined_call_operand.hbm [shape: f32[2,16], index: 0, kind: input, shape index: {}]   ;;  %s399_s1 = inlined_call_operand.hbm [shape: bf16[2,128,128], index: 1, kind: input, shape index: {}]   ;;  %s400_s2 = inlined_call_operand.hbm [shape: f32[2,1,128], index: 2, kind: input, shape index: {}]   ;;  %s401_s3 = inlined_call_operand.hbm [shape: f32[2,4], index: 3, kind: output, shape index: {}]  }
   0x1   :  { %9 = vsyncpa [#allocation6], 0  ;;  %s26_s14 = sshll.u32 %s399_s1, 4  ;;  %s27_s14 = int_to_ptr.hbm [resolvable:$true] %s26_s14 }
   0x2   :  { %10 = vsyncpa [#allocation4], 0  ;;  %s358_s15 = smov [#allocation5]   ;;  %s16_s19 = sshll.u32 %s398_s0, 4  ;;  %s17_s19 = int_to_ptr.hbm [resolvable:$true] %s16_s19 }
   0x3   :  { %s28_s16 = sshll.u32 %s358_s15, 4  ;;  %s359_s20 = smov 64   ;;  %s29_s16 = int_to_ptr.vmem [resolvable:$true] %s28_s16 }
   0x4   :  { %s360_s21 = smov 4   ;;  %s361_s22 = smov [#allocation2]  }
   0x5   :  { %34 = dma.hbm_to_vmem [thread:$0]  %s27_s14, 2048, %s29_s16, [#allocation6], %s359_s20, %s359_s20, %s360_s21  }
   0x6   :  { %s18_s23 = sshll.u32 %s361_s22, 4  ;;  %s39_s26 = sshll.u32 %s400_s2, 4  ;;  %s19_s23 = int_to_ptr.vmem [resolvable:$true] %s18_s23  ;;  %s40_s26 = int_to_ptr.hbm [resolvable:$true] %s39_s26 }
   0x7   :  { %21 = dma.hbm_to_vmem [thread:$0]  %s17_s19, 32, %s19_s23, [#allocation3]  }
   0x8   :  { %s362_s1 = smov [#allocation7]   ;;  %s363_s28 = smov 16  }
   0x9   :  { %s41_s27 = sshll.u32 %s362_s1, 4  ;;  %s364_s29 = smov 1   ;;  %s42_s27 = int_to_ptr.vmem [resolvable:$true] %s41_s27 }
   0xa   :  { %47 = dma.hbm_to_vmem [thread:$0]  %s40_s26, 32, %s42_s27, [#allocation6], %s363_s28, %s363_s28, %s364_s29  }
   0xb   :  { %352 = dma.done.wait [#allocation3], 32  }
   0xc   :  { %353 = vsyncadd [#allocation3], 4294967264 }
   0xd   :  { %354 = dma.done.wait [#allocation6], 2080  }
   0xe   :  { %355 = vsyncadd [#allocation6], 4294965216  ;;  %v235_v0 = vld [vmem:[#allocation5] sm:$0xff]  ;;  %v61_v1 = vld [vmem:[#allocation2] sm:$0x3]  ;;  %vm75_vm0 = vcmask 130048  }
   0xf   :  { %v243_v2 = vld [vmem:[#allocation5 + $0x78] sm:$0xff]  ;;  %v62_v3 = vpack.c.bf16 %v61_v1, %v61_v1  ;;  %86 = vmatpush.bf16.msra.mxu0 %v235_v0  ;;  %v242_v4 = vld [vmem:[#allocation5 + $0x70] sm:$0xff]  ;;  %v241_v5 = vld [vmem:[#allocation5 + $0x68] sm:$0xff]  ;;  %s365_s0 = smov [#allocation8]   ;;  %s187_s5 = sshll.u32 %s401_s3, 4  ;;  %vm178_vm1 = vcmask 25600   ;;  %s188_s5 = int_to_ptr.hbm [resolvable:$true] %s187_s5 }
  0x10   :  { %164 = vmatpush.bf16.msra.mxu1 %v243_v2  ;;  %v240_v6 = vld [vmem:[#allocation5 + $0x60] sm:$0xff]  ;;  %v239_v7 = vld [vmem:[#allocation5 + $0x58] sm:$0xff]  ;;  %v238_v8 = vld [vmem:[#allocation5 + $0x50] sm:$0xff]  ;;  %s185_s2 = sshll.u32 %s365_s0, 4  ;;  %s186_s2 = int_to_ptr.vmem [resolvable:$true] %s185_s2 }
  0x11   :  { %v237_v9 = vld [vmem:[#allocation5 + $0x48] sm:$0xff]  ;;  %v236_v10 = vld [vmem:[#allocation5 + $0x40] sm:$0xff] }
  0x12   :  { %202 = vmatmul.msk.bf16.vlgmr.msra.gmra.mxu0 %vm75_vm0, %v62_v3  ;;  %v252_v11 = vld [vmem:[#allocation7] ss:$0 sm:$0xff]  ;;  %v253_v17 = vld [vmem:[#allocation7 + $0x1] ss:$0 sm:$0xff] }
  0x14   :  { %165 = vmatpush.bf16.msra.mxu1 %v242_v4 }
  0x18   :  { %166 = vmatpush.bf16.msra.mxu1 %v241_v5 }
  0x1c   :  { %167 = vmatpush.bf16.msra.mxu1 %v240_v6 }
  0x20   :  { %168 = vmatpush.bf16.msra.mxu1 %v239_v7 }
  0x24   :  { %169 = vmatpush.bf16.msra.mxu1 %v238_v8 }
  0x28   :  { %170 = vmatpush.bf16.msra.mxu1 %v237_v9 }
  0x2c   :  { %171 = vmatpush.bf16.msra.mxu1 %v236_v10 }
  0x8f   :  { %v88_v12 = vpop.f32.mrf.mxu0 }
  0x90   :  { %v89_v13 = vadd.f32 %v252_v11, %v88_v12 }
  0x92   :  { %v92_v14 = vmax.f32 %v89_v13, 0.0 }
  0x94   :  { %v93_v15 = vpack.c.bf16 %v92_v14, %v92_v14 }
  0x96   :  { %172 = vmatmul.bf16.vlgmr.msra.gmra.mxu1 %v93_v15 }
  0x97   :  { %v90_v16 = vpop.f32.mrf.mxu0 }
 0x113   :  { %v173_v18 = vpop.f32.mrf.mxu1 }
 0x114   :  { %v174_v19 = vadd.f32 %v253_v17, %v173_v18 }
 0x116   :  { %254 = vtanh.f32 %v174_v19 }
 0x11b   :  { %v175_v20 = vpop.f32.mrf.mxu1 }
 0x11c   :  { %v255_v21 = vpop.eup %254 }
 0x11d   :  { %179 = vst.msk [vmem:[#allocation8] sm:$0x3] %vm178_vm1, %v255_v21 }
 0x11e   :  { %190 = dma.vmem_to_hbm [thread:$0]  %s186_s2, 32, %s188_s5, [#allocation4]  }
 0x11f   :  { %356 = dma.done.wait [#allocation4], 32  }
 0x120   :  { %357 = vsyncadd [#allocation4], 4294967264 }
 0x121   :  { %195 = vsyncpa [#allocation3], 1 }
 0x122   :  { %196 = vsyncpa [#allocation6], 1 }
 0x123   :  { %197 = vsyncpa [#allocation4], 1 }

</bundles_post_ra>
